<compile_context>
chip_gen: v6e
topology: v6e:2x2x1
jax: 0.10.0
libtpu: 0.0.40
codegen_flags: <defaults>
</compile_context>

<pallas_src>
import functools

import jax
import jax.numpy as jnp
from jax.experimental import pallas as pl
from jax.experimental.pallas import tpu as pltpu

LANE = 128
_MIN_BLOCKS = 4               # target grid size once pipelining is worth it
_MIN_PIPELINE_BYTES = 256 * 1024   # below this, a single block is fine


@functools.lru_cache(maxsize=1)
def _target_block_bytes() -> int:
    """Per-block VMEM budget, generation aware.

    v7x: ~4 MiB blocks (in+out double-buffered ~16 MiB, well under the 32 MiB
         default scoped-VMEM limit) to amortize the ~0.35 us per-grid-step
         overhead against ~3.2 TB/s HBM.
    v5e/v6e: ~2 MiB blocks (8 MiB double-buffered, under v5e's 16 MiB default
         scoped limit) — already at the measured roofline plateau.
    """
    try:
        kind = jax.devices()[0].device_kind.lower()
    except Exception:  # no devices visible at trace time -> conservative default
        return 2 * 1024 * 1024
    if "v7" in kind or "7x" in kind:
        return 4 * 1024 * 1024
    return 2 * 1024 * 1024


def _swish_kernel(x_ref, o_ref):
    x = x_ref[...]
    # f32 intermediate for accuracy; free on an HBM-bound kernel (EUP/VPU slack).
    xf = x.astype(jnp.float32)
    o_ref[...] = (xf * jax.nn.sigmoid(xf)).astype(o_ref.dtype)


def _swish_2d(x2d: jax.Array, *, inplace: bool = False) -> jax.Array:
    """Swish over a 2-D slab (rows, cols); cols need not be 128-aligned."""
    rows, cols = x2d.shape
    dtype = x2d.dtype
    itemsize = jnp.dtype(dtype).itemsize
    # Packed-sublane multiple: 8 for f32, 16 for bf16/f16, 32 for int8/fp8.
    sublane = max(8, 32 // max(itemsize, 1))

    cols_padded = ((cols + LANE - 1) // LANE) * LANE  # VMEM lane padding only
    row_bytes = cols_padded * itemsize
    target = _target_block_bytes()

    if sublane * row_bytes > 2 * target:
        # Pathologically wide unaligned rows: no legal VMEM-sized block exists
        # (can't split an unaligned lane dim). Extremely rare; plain XLA is fine.
        xf = x2d.astype(jnp.float32)
        return (xf * jax.nn.sigmoid(xf)).astype(dtype)

    # Block rows targeting ~`target` bytes per block, sublane-rounded.
    tile_rows = max(sublane, (target // row_bytes) // sublane * sublane)

    # Minimum-block-count policy: once the slab is big enough that pipelining
    # matters, make sure the grid has >= _MIN_BLOCKS steps so DMA/compute
    # overlap and (on v7x) both TensorCores get work.
    slab_bytes = rows * row_bytes
    if slab_bytes > _MIN_PIPELINE_BYTES:
        cap = max(sublane, (rows // _MIN_BLOCKS) // sublane * sublane)
        tile_rows = min(tile_rows, cap)

    if tile_rows >= rows:
        tile_rows = rows  # single block == full array dims -> always legal

    num_blocks = pl.cdiv(rows, tile_rows)  # ragged last block handled by masking

    return pl.pallas_call(
        _swish_kernel,
        out_shape=jax.ShapeDtypeStruct((rows, cols), dtype),
        grid=(num_blocks,),
        in_specs=[pl.BlockSpec((tile_rows, cols), lambda i: (i, 0))],
        out_specs=pl.BlockSpec((tile_rows, cols), lambda i: (i, 0)),
        input_output_aliases=({0: 0} if inplace else {}),
        compiler_params=pltpu.CompilerParams(
            dimension_semantics=("parallel",),
        ),
    )(x2d)


def swish(x: jax.Array, *, inplace: bool = False) -> jax.Array:
    """Elementwise swish: x * sigmoid(x). Matches torch `x * x.sigmoid()`.

    Set inplace=True only when the caller donates x (halves peak HBM footprint
    by writing the output into the input buffer).
    """
    orig_shape = x.shape
    n = x.size
    if n == 0:
        return x
    if x.ndim == 0:
        xf = x.astype(jnp.float32)
        return (xf * jax.nn.sigmoid(xf)).astype(x.dtype)

    if n % LANE == 0:
        # Common case (NCHW etc.): pure metadata reshape to a lane-dense slab.
        out = _swish_2d(x.reshape(n // LANE, LANE), inplace=inplace)
        return out.reshape(orig_shape)

    if x.ndim >= 2:
        # Unaligned total size: collapse leading dims, keep the full last dim
        # as the block's lane dim (legal; HBM traffic stays n reads + n writes).
        rows = n // orig_shape[-1]
        out = _swish_2d(x.reshape(rows, orig_shape[-1]), inplace=inplace)
        return out.reshape(orig_shape)

    # 1-D, size not a multiple of 128: kernel on the aligned prefix, plain XLA
    # for the (<128-element) tail.
    n_aligned = (n // LANE) * LANE
    tail = x[n_aligned:]
    tail_f = tail.astype(jnp.float32)
    tail_out = (tail_f * jax.nn.sigmoid(tail_f)).astype(x.dtype)
    if n_aligned == 0:
        return tail_out
    head = _swish_2d(x[:n_aligned].reshape(n_aligned // LANE, LANE)).reshape(-1)
    return jnp.concatenate([head, tail_out])


if __name__ == "__main__":
    key = jax.random.PRNGKey(0)

    # Small NCHW input consistent with how this activation is typically used.
    x = jax.random.normal(key, (2, 4, 16, 16), dtype=jnp.float32)
    y = swish(x)
    jax.block_until_ready(y)
    y_ref = x * jax.nn.sigmoid(x)
    assert y.shape == x.shape and y.dtype == x.dtype
    assert jnp.allclose(y, y_ref, atol=1e-6, rtol=1e-6)

    # Larger slab (> 256 KiB) to exercise the multi-block pipelined path.
    xl = jax.random.normal(jax.random.PRNGKey(3), (4, 8, 32, 32), dtype=jnp.float32)
    yl = swish(xl)
    jax.block_until_ready(yl)
    assert jnp.allclose(yl, xl * jax.nn.sigmoid(xl), atol=1e-6, rtol=1e-6)

    # Robustness: size not a multiple of 128 lanes (unaligned full-dim block path).
    x2 = jax.random.normal(jax.random.PRNGKey(1), (3, 5, 7), dtype=jnp.float32)
    y2 = swish(x2)
    jax.block_until_ready(y2)
    assert jnp.allclose(y2, x2 * jax.nn.sigmoid(x2), atol=1e-6, rtol=1e-6)

    # Robustness: 1-D unaligned (prefix kernel + XLA tail path).
    x4 = jax.random.normal(jax.random.PRNGKey(4), (300,), dtype=jnp.float32)
    y4 = swish(x4)
    jax.block_until_ready(y4)
    assert jnp.allclose(y4, x4 * jax.nn.sigmoid(x4), atol=1e-6, rtol=1e-6)

    # Robustness: bf16 input (dtype-aware sublane / tile sizing).
    x3 = jax.random.normal(jax.random.PRNGKey(2), (2, 4, 16, 16)).astype(jnp.bfloat16)
    y3 = swish(x3)
    jax.block_until_ready(y3)
    y3_ref = (x3.astype(jnp.float32) * jax.nn.sigmoid(x3.astype(jnp.float32))).astype(jnp.bfloat16)
    assert y3.dtype == jnp.bfloat16
    assert jnp.allclose(y3.astype(jnp.float32), y3_ref.astype(jnp.float32), atol=1e-2, rtol=1e-2)

    print("KERNEL_OK")
</pallas_src>

<mosaic_0001>
module attributes {stable_mosaic.version = 11 : i64} {
  func.func @_swish_kernel(%arg0: i32, %arg1: memref<16x128xf32, #tpu.memory_space<vmem>>, %arg2: memref<16x128xf32, #tpu.memory_space<vmem>>) attributes {dimension_semantics = [#tpu.dimension_semantics<parallel>], iteration_bounds = array<i64: 1>, scalar_prefetch = 0 : i64, scratch_operands = 0 : i64, tpu.core_type = #tpu.core_type<tc>, window_params = [{transform_indices = @transform_0, window_bounds = array<i64: 16, 128>}, {transform_indices = @transform_1, window_bounds = array<i64: 16, 128>}]} {
    %c0 = arith.constant 0 : index
    %c0_0 = arith.constant 0 : index
    %0 = vector.load %arg1[%c0, %c0_0] : memref<16x128xf32, #tpu.memory_space<vmem>>, vector<16x128xf32>
    %1 = arith.negf %0 : vector<16x128xf32>
    %2 = math.exp %1 : vector<16x128xf32>
    %cst = arith.constant 1.000000e+00 : f32
    %3 = vector.broadcast %cst : f32 to vector<16x128xf32>
    %4 = arith.addf %3, %2 : vector<16x128xf32>
    %5 = arith.divf %3, %4 : vector<16x128xf32>
    %6 = arith.mulf %0, %5 : vector<16x128xf32>
    %c0_1 = arith.constant 0 : index
    %c0_2 = arith.constant 0 : index
    %7 = vector.load %arg2[%c0_1, %c0_2] : memref<16x128xf32, #tpu.memory_space<vmem>>, vector<16x128xf32>
    tpu.vector_store %arg2[%c0_1, %c0_2], %6 {strides = array<i32>} : memref<16x128xf32, #tpu.memory_space<vmem>>, vector<16x128xf32>,
    return
  }
  func.func @transform_0(%arg0: i32) -> (i32, i32) {
    %c0_i32 = arith.constant 0 : i32
    %c0_i32_0 = arith.constant 0 : i32
    return %arg0, %c0_i32 : i32, i32
  }
  func.func @transform_1(%arg0: i32) -> (i32, i32) {
    %c0_i32 = arith.constant 0 : i32
    %c0_i32_0 = arith.constant 0 : i32
    return %arg0, %c0_i32 : i32, i32
  }
}

</mosaic_0001>

<bundles_post_ra>
// kernel: tpu_custom_call.1
= control target key start
LH: loop header
LB: loop body
LE: loop exit
PB: predicated region body
PF: predicated region fallthrough
CT: control target
= control target key end

     0   :  { %6 = vsyncpa [#allocation3], 0  ;;  %s142_s0 = inlined_call_operand.hbm [shape: f32[16,128], index: 0, kind: input, shape index: {}]   ;;  %s143_s1 = inlined_call_operand.hbm [shape: f32[16,128], index: 1, kind: output, shape index: {}]  }
   0x1   :  { %7 = vsyncpa [#allocation4], 0  ;;  %s116_s6 = smov [#allocation2]  }
   0x2   :  { %s13_s7 = sshll.u32 %s116_s6, 4  ;;  %s14_s7 = int_to_ptr.vmem [resolvable:$true] %s13_s7 }
   0x3   :  { %s80_s8 = scalar_lea.vmem %s14_s7, 256  ;;  %p85_p1 = scmp.lt.s32.totalorder %s14_s7, %s14_s7 }
   0x4   :  { %p81_p0 = scmp.ne.s32.totalorder %s14_s7, %s80_s8  ;;  %p86_p2 = scmp.lt.s32.totalorder %s80_s8, %s80_s8 }
   0x6   :  { %p87_p3 = por %p86_p2, %p85_p1 }
   0x8   :  { %p88_p4 = pnand %p87_p3, %p81_p0 }
   0xa   :  { %91 = shalt.err (!%p88_p4)
}
   0xb   :  { %s117_s9 = smov 128   ;;  %s118_s10 = smov 8  }
   0xc   :  { %19 = dma.hbm_to_vmem [thread:$0]  %s142_s0, 256, %s14_s7, [#allocation3], %s117_s9, %s117_s9, %s118_s10  }
   0xd   :  { %112 = dma.done.wait [#allocation3], 256  }
   0xe   :  { %113 = vsyncadd [#allocation3], 4294967040  ;;  %v23_v0 = vld [vmem:[#allocation2] sm:$0xff]  ;;  %v24_v1 = vld [vmem:[#allocation2 + $0x8] sm:$0xff]  ;;  %s119_s13 = smov [#allocation5]  }
   0xf   :  { %v58_v2 = vmul.f32 -1.442695, %v23_v0  ;;  %v59_v3 = vmul.f32 -1.442695, %v24_v1  ;;  %s46_s14 = sshll.u32 %s119_s13, 4  ;;  %s47_s14 = int_to_ptr.vmem [resolvable:$true] %s46_s14 }
  0x10   :  { %s92_s0 = scalar_lea.vmem %s47_s14, 256  ;;  %p97_p6 = scmp.lt.s32.totalorder %s47_s14, %s47_s14 }
  0x11   :  { %64 = vpow2.f32 %v58_v2  ;;  %p93_p5 = scmp.ne.s32.totalorder %s47_s14, %s92_s0  ;;  %p98_p7 = scmp.lt.s32.totalorder %s92_s0, %s92_s0 }
  0x12   :  { %66 = vpow2.f32 %v59_v3 }
  0x13   :  { %p99_p8 = por %p98_p7, %p97_p6 }
  0x15   :  { %p100_p9 = pnand %p99_p8, %p93_p5 }
  0x1e   :  { %v65_v4 = vpop.eup %64 }
  0x1f   :  { %v67_v5 = vpop.eup %66  ;;  %v31_v6 = vadd.f32 1.0, %v65_v4 }
  0x20   :  { %v32_v7 = vadd.f32 1.0, %v67_v5 }
  0x21   :  { %68 = vrcp.f32 %v31_v6 }
  0x22   :  { %70 = vrcp.f32 %v32_v7 }
  0x2e   :  { %v69_v8 = vpop.eup %68 }
  0x2f   :  { %v71_v9 = vpop.eup %70  ;;  %v37_v10 = vmul.f32 %v69_v8, %v23_v0 }
  0x30   :  { %v38_v11 = vmul.f32 %v71_v9, %v24_v1 }
  0x31   :  { %39 = vst [vmem:[#allocation5] sm:$0xff] %v37_v10 }
  0x32   :  { %40 = vst [vmem:[#allocation5 + $0x8] sm:$0xff] %v38_v11 }
  0x33   :  { %103 = shalt.err (!%p100_p9)
}
  0x34   :  { %52 = dma.vmem_to_hbm [thread:$0]  %s47_s14, 256, %s143_s1, [#allocation4], %s117_s9, %s117_s9, %s118_s10  }
  0x35   :  { %114 = dma.done.wait [#allocation4], 256  }
  0x36   :  { %115 = vsyncadd [#allocation4], 4294967040 }
  0x37   :  { %56 = vsyncpa [#allocation3], 1 }
  0x38   :  { %57 = vsyncpa [#allocation4], 1 }

</bundles_post_ra>
